<compile_context>
chip_gen: v6e
topology: v6e:2x2x1
jax: 0.10.0
libtpu: 0.0.40
codegen_flags: <defaults>
</compile_context>

<pallas_src>
import functools

import jax
import jax.numpy as jnp
from jax import lax
from jax.experimental import pallas as pl
from jax.experimental.pallas import tpu as pltpu


def _round_up(x, m):
    return ((x + m - 1) // m) * m


# ----------------------------------------------------------------------------
# Pallas kernel: out[b, :, t0:t0+TM] = relu(W @ frames[b, :, t0:t0+TM])
# ----------------------------------------------------------------------------
def _encoder_matmul_relu_kernel(w_ref, frames_ref, out_ref):
    # w_ref:      (N, L)   compute dtype (resident across the grid)
    # frames_ref: (L, TM)  compute dtype (lane-dense: encoded time on lanes)
    # out_ref:    (N, TM)  output dtype
    acc = jnp.dot(w_ref[...], frames_ref[...],
                  preferred_element_type=jnp.float32)           # MXU
    out_ref[...] = jnp.maximum(acc, 0.0).astype(out_ref.dtype)  # ReLU on VPU


def _encoder_pallas(w2, frames_t, *, t_enc, tm_eff, out_dtype):
    """w2: (N, L), frames_t: (B, L, T_pad) -> (B, N, t_enc) in out_dtype."""
    B, L, T_pad = frames_t.shape
    N = w2.shape[0]
    grid = (B, T_pad // tm_eff)

    out_isz = jnp.dtype(out_dtype).itemsize
    in_isz = jnp.dtype(frames_t.dtype).itemsize
    cost = pl.CostEstimate(
        flops=2 * B * N * L * t_enc,
        transcendentals=0,
        bytes_accessed=out_isz * B * N * t_enc + in_isz * B * L * T_pad
                       + in_isz * N * L,
    )

    return pl.pallas_call(
        _encoder_matmul_relu_kernel,
        out_shape=jax.ShapeDtypeStruct((B, N, t_enc), out_dtype),
        grid_spec=pltpu.PrefetchScalarGridSpec(
            num_scalar_prefetch=0,
            grid=grid,
            in_specs=[
                # Whole filter bank, resident in VMEM across the grid.
                pl.BlockSpec((N, L), lambda b, t: (0, 0)),
                # Lane-dense frame tile: encoded time on the 128-lane dim.
                pl.BlockSpec((pl.Squeezed(), L, tm_eff),
                             lambda b, t: (b, 0, t)),
            ],
            # Output written directly in (B, N, T_enc) layout; the last time
            # tile may overhang T_enc, those stores are masked by Pallas.
            out_specs=pl.BlockSpec((pl.Squeezed(), N, tm_eff),
                                   lambda b, t: (b, 0, t)),
        ),
        compiler_params=pltpu.CompilerParams(
            dimension_semantics=("parallel", "parallel"),
            vmem_limit_bytes=32 * 1024 * 1024),
        cost_estimate=cost,
    )(w2, frames_t)


# ----------------------------------------------------------------------------
# Gather-free lane-dense framing:  frames[b, i, t] = x_pad[b, t*stride + i]
# ----------------------------------------------------------------------------
def _frames_lane_dense(x, *, L, stride, T_pad, compute_dtype):
    B, T = x.shape
    T_need = (T_pad - 1) * stride + L
    if L % stride == 0:
        # Reshape path: x -> (B, rows, stride) -> transpose -> R shifted slices.
        R = L // stride
        rows = T_pad + R - 1                      # rows * stride == T_need
        total = rows * stride
        if total > T:
            x = jnp.pad(x, ((0, 0), (0, total - T)))
        elif total < T:
            x = lax.slice_in_dim(x, 0, total, axis=1)
        x = x.astype(compute_dtype)
        xr_t = jnp.transpose(x.reshape(B, rows, stride), (0, 2, 1))  # (B,stride,rows)
        # frames[b, r*stride + s, t] = xr_t[b, s, t + r] = x[b, t*stride + r*stride + s]
        return jnp.concatenate(
            [lax.slice_in_dim(xr_t, r, r + T_pad, axis=2) for r in range(R)],
            axis=1)                               # (B, L, T_pad)
    # General stride: L strided slices (still no gather).
    if T_need > T:
        x = jnp.pad(x, ((0, 0), (0, T_need - T)))
    x = x.astype(compute_dtype)
    end = (T_pad - 1) * stride + 1
    return jnp.stack(
        [lax.slice(x, (0, i), (B, i + end), (1, stride)) for i in range(L)],
        axis=1)                                   # (B, L, T_pad)


def _choose_time_tiling(T_enc, tm, B):
    # Balanced tiles: minimize masked overhang instead of rounding T_enc up
    # to a full tm-sized tile.
    n_tiles = pl.cdiv(T_enc, tm)
    tm_eff = _round_up(pl.cdiv(T_enc, n_tiles), 128)
    # v7x has 2 TensorCores: make sure a single-utterance input still yields
    # >= 2 grid steps (one extra cheap step on 1-TC v5e/v6e).
    if B == 1 and n_tiles == 1 and tm_eff > 128:
        n_tiles = 2
        tm_eff = _round_up(pl.cdiv(T_enc, 2), 128)
    return tm_eff, n_tiles * tm_eff


# ----------------------------------------------------------------------------
# TasEncoder forward (padding / framing / dtype glue in plain JAX)
# ----------------------------------------------------------------------------
def tas_encoder_forward(x, weight, *, L, N, stride=None, sequence_lengths=None,
                        tm=2048, compute_dtype=jnp.bfloat16,
                        out_dtype=jnp.float32):
    """
    Args:
        x: (B, T) or (T,) float32 time series.
        weight: (N, 1, L) Conv1d filter bank (PyTorch layout, bias=False).
        sequence_lengths: optional (B,) int32 sequence lengths.
        tm: max encoded frames per grid step (2048 default; 4096 ok on v6e/v7x).
        compute_dtype: MXU operand dtype (bf16 default; f32 for tighter parity).
        out_dtype: output dtype (f32 default = PyTorch parity; bf16 ~2x faster).

    Returns:
        w: (B, N, T_enc) encoded output (post-ReLU).
        sequence_lengths: encoded-domain lengths or None.
    """
    if stride is None:
        stride = L // 2
    assert x.ndim in (1, 2), f"only 1D/2D input supported, got {x.shape}"
    if x.ndim == 1:
        x = x[None, :]
    assert weight.shape == (N, 1, L), weight.shape
    B, l = x.shape

    half = L // 2
    sq_offset = -1
    if l % half > 0:
        padding = half - l % half
        x = jnp.pad(x, ((0, 0), (0, padding)))
        sq_offset = 0
    if sequence_lengths is not None:
        sequence_lengths = sequence_lengths // half + sq_offset

    T = x.shape[-1]
    T_enc = (T - L) // stride + 1
    assert T_enc >= 1, "input shorter than one filter length"

    tm_eff, T_pad = _choose_time_tiling(T_enc, tm, B)

    frames_t = _frames_lane_dense(x, L=L, stride=stride, T_pad=T_pad,
                                  compute_dtype=compute_dtype)
    w2 = weight[:, 0, :].astype(compute_dtype)            # (N, L)

    out = _encoder_pallas(w2, frames_t, t_enc=T_enc, tm_eff=tm_eff,
                          out_dtype=out_dtype)
    return out, sequence_lengths


# ----------------------------------------------------------------------------
# Reference (pure JAX conv) for sanity checks
# ----------------------------------------------------------------------------
def _reference_forward(x, weight, *, L, stride, compute_dtype=jnp.float32):
    if x.ndim == 1:
        x = x[None, :]
    half = L // 2
    l = x.shape[-1]
    if l % half > 0:
        x = jnp.pad(x, ((0, 0), (0, half - l % half)))
    xc = x.astype(compute_dtype).astype(jnp.float32)
    wc = weight.astype(compute_dtype).astype(jnp.float32)
    y = lax.conv_general_dilated(
        xc[:, None, :], wc, window_strides=(stride,), padding="VALID",
        dimension_numbers=("NCH", "OIH", "NCH"),
        precision=lax.Precision.HIGHEST)
    return jnp.maximum(y, 0.0)


if __name__ == "__main__":
    key = jax.random.PRNGKey(0)

    def make_weight(k, N, L):
        # PyTorch-style Conv1d init: U(-sqrt(k), sqrt(k)), k = 1/(1*L)
        bound = (1.0 / L) ** 0.5
        return jax.random.uniform(k, (N, 1, L), dtype=jnp.float32,
                                  minval=-bound, maxval=bound)

    # ---- Case 1: default config, exact-fit tile, sequence_lengths ----------
    L, N, stride = 16, 256, 8
    B, T = 2, 4098                       # padded to 4104 -> T_enc = 512
    k1, k2, key = jax.random.split(key, 3)
    x = jax.random.normal(k1, (B, T), dtype=jnp.float32)
    w = make_weight(k2, N, L)
    seq_len = jnp.array([4098, 3000], dtype=jnp.int32)

    fwd = jax.jit(functools.partial(tas_encoder_forward, L=L, N=N, stride=stride))
    y, sl = fwd(x, w, sequence_lengths=seq_len)
    y = jax.block_until_ready(y)
    sl = jax.block_until_ready(sl)
    ref_bf16 = jax.block_until_ready(
        _reference_forward(x, w, L=L, stride=stride, compute_dtype=jnp.bfloat16))
    ref_f32 = jax.block_until_ready(_reference_forward(x, w, L=L, stride=stride))
    assert y.shape == ref_f32.shape, (y.shape, ref_f32.shape)
    assert jnp.allclose(y, ref_bf16, atol=1e-4, rtol=1e-4), "case1 vs bf16 ref"
    assert jnp.allclose(y, ref_f32, atol=5e-2, rtol=5e-2), "case1 vs f32 ref"
    assert sl.tolist() == [4098 // 8, 3000 // 8], sl

    # ---- Case 2: T_enc not a multiple of the tile (masked tail) ------------
    L, N, stride = 16, 64, 8
    B, T = 2, 4808                       # T_enc = 600; tm=512 -> 2 tiles of 384
    k1, k2, key = jax.random.split(key, 3)
    x = jax.random.normal(k1, (B, T), dtype=jnp.float32)
    w = make_weight(k2, N, L)
    fwd = jax.jit(functools.partial(tas_encoder_forward, L=L, N=N,
                                    stride=stride, tm=512))
    y, _ = fwd(x, w)
    y = jax.block_until_ready(y)
    ref_bf16 = jax.block_until_ready(
        _reference_forward(x, w, L=L, stride=stride, compute_dtype=jnp.bfloat16))
    assert y.shape == (B, N, 600), y.shape
    assert jnp.allclose(y, ref_bf16, atol=1e-4, rtol=1e-4), "case2 masked tail"

    # ---- Case 3: 1-D single utterance (v7x grid split), bf16 output --------
    L, N, stride = 16, 128, 8
    T = 1608                             # T_enc = 200 -> 2 tiles of 128
    k1, k2, key = jax.random.split(key, 3)
    x = jax.random.normal(k1, (T,), dtype=jnp.float32)
    w = make_weight(k2, N, L)
    fwd = jax.jit(functools.partial(tas_encoder_forward, L=L, N=N, stride=stride,
                                    out_dtype=jnp.bfloat16))
    y, sl = fwd(x, w)
    y = jax.block_until_ready(y)
    assert sl is None
    ref_f32 = jax.block_until_ready(_reference_forward(x, w, L=L, stride=stride))
    assert y.shape == (1, N, 200) and y.dtype == jnp.bfloat16, (y.shape, y.dtype)
    assert jnp.allclose(y.astype(jnp.float32), ref_f32, atol=5e-2, rtol=5e-2), \
        "case3 bf16 output"

    # ---- Case 4: stride does not divide L (strided-slice framing), f32 -----
    L, N, stride = 16, 32, 5
    B, T = 2, 160                        # T_enc = 29 -> one 128-frame tile
    k1, k2, key = jax.random.split(key, 3)
    x = jax.random.normal(k1, (B, T), dtype=jnp.float32)
    w = make_weight(k2, N, L)
    fwd = jax.jit(functools.partial(tas_encoder_forward, L=L, N=N, stride=stride,
                                    compute_dtype=jnp.float32))
    y, _ = fwd(x, w)
    y = jax.block_until_ready(y)
    ref_f32 = jax.block_until_ready(_reference_forward(x, w, L=L, stride=stride))
    assert y.shape == (B, N, 29), y.shape
    assert jnp.allclose(y, ref_f32, atol=5e-2, rtol=5e-2), "case4 general stride"

    print("KERNEL_OK")
</pallas_src>

<mosaic_0001>
module attributes {stable_mosaic.version = 11 : i64} {
  func.func @_encoder_matmul_relu_kernel(%arg0: i32, %arg1: i32, %arg2: memref<256x16xbf16, #tpu.memory_space<vmem>>, %arg3: memref<1x16x512xbf16, #tpu.memory_space<vmem>>, %arg4: memref<1x256x512xf32, #tpu.memory_space<vmem>>) attributes {dimension_semantics = [#tpu.dimension_semantics<parallel>, #tpu.dimension_semantics<parallel>], iteration_bounds = array<i64: 2, 1>, scalar_prefetch = 0 : i64, scratch_operands = 0 : i64, tpu.core_type = #tpu.core_type<tc>, window_params = [{pipeline_mode = #tpu.pipeline_mode<synchronous>, transform_indices = @transform_0, window_bounds = array<i64: 256, 16>}, {transform_indices = @transform_1, window_bounds = array<i64: 1, 16, 512>}, {transform_indices = @transform_2, window_bounds = array<i64: 1, 256, 512>}]} {
    %c0 = arith.constant 0 : index
    %c0_0 = arith.constant 0 : index
    %0 = vector.load %arg2[%c0, %c0_0] : memref<256x16xbf16, #tpu.memory_space<vmem>>, vector<256x16xbf16>
    %c0_1 = arith.constant 0 : index
    %c0_2 = arith.constant 0 : index
    %c0_3 = arith.constant 0 : index
    %1 = vector.load %arg3[%c0_1, %c0_2, %c0_3] : memref<1x16x512xbf16, #tpu.memory_space<vmem>>, vector<1x16x512xbf16>
    %2 = vector.shape_cast %1 : vector<1x16x512xbf16> to vector<16x512xbf16>
    %cst = arith.constant dense<0.000000e+00> : vector<256x512xf32>
    %3 = tpu.matmul %0, %2, %cst {dimension_numbers = #tpu.dot_dimension_numbers<[1], [0], [0], [1], [0, 0, 1, 1], [], []>} : vector<256x16xbf16>, vector<16x512xbf16>, vector<256x512xf32> -> vector<256x512xf32>
    %cst_4 = arith.constant 0.000000e+00 : f32
    %4 = vector.broadcast %cst_4 : f32 to vector<256x512xf32>
    %5 = arith.maximumf %3, %4 : vector<256x512xf32>
    %c0_5 = arith.constant 0 : index
    %c0_6 = arith.constant 0 : index
    %c0_7 = arith.constant 0 : index
    %6 = vector.load %arg4[%c0_5, %c0_6, %c0_7] : memref<1x256x512xf32, #tpu.memory_space<vmem>>, vector<1x256x512xf32>
    %7 = vector.shape_cast %6 : vector<1x256x512xf32> to vector<256x512xf32>
    %8 = vector.shape_cast %5 : vector<256x512xf32> to vector<1x256x512xf32>
    tpu.vector_store %arg4[%c0_5, %c0_6, %c0_7], %8 {strides = array<i32>} : memref<1x256x512xf32, #tpu.memory_space<vmem>>, vector<1x256x512xf32>,
    return
  }
  func.func @transform_0(%arg0: i32, %arg1: i32) -> (i32, i32) {
    %c0_i32 = arith.constant 0 : i32
    %c0_i32_0 = arith.constant 0 : i32
    %c0_i32_1 = arith.constant 0 : i32
    return %c0_i32, %c0_i32_0 : i32, i32
  }
  func.func @transform_1(%arg0: i32, %arg1: i32) -> (i32, i32, i32) {
    %c0_i32 = arith.constant 0 : i32
    %c0_i32_0 = arith.constant 0 : i32
    return %arg0, %c0_i32, %arg1 : i32, i32, i32
  }
  func.func @transform_2(%arg0: i32, %arg1: i32) -> (i32, i32, i32) {
    %c0_i32 = arith.constant 0 : i32
    %c0_i32_0 = arith.constant 0 : i32
    return %arg0, %c0_i32, %arg1 : i32, i32, i32
  }
}

</mosaic_0001>

<bundles_post_ra>
// kernel: tas_encoder_forward.1
= control target key start
LH: loop header
LB: loop body
LE: loop exit
PB: predicated region body
PF: predicated region fallthrough
CT: control target
= control target key end

     0   :  { %7 = vsyncpa [#allocation3], 0  ;;  %s1701_s0 = inlined_call_operand.vmem [shape: bf16[256,16], index: 0, kind: input, shape index: {}]   ;;  %s1702_s1 = inlined_call_operand.vmem [shape: bf16[2,16,512], index: 1, kind: input, shape index: {}]   ;;  %s1703_s2 = inlined_call_operand.hbm [shape: f32[2,256,512], index: 2, kind: output, shape index: {}]  }
   0x1   :  { %9 = vsyncpa [#allocation3 + $0x1], 0  ;;  %s1340_s9 = smov 0   ;;  %s1342_s10 = smov 0  }
   0x2   :  { %s1344_s11 = smov 0   ;;  %s1346_s12 = smov 0  }
   0x3   :  { %s1348_s13 = smov 0   ;;  %s1350_s14 = smov 0  }
   0x4 LB: > { %s1096_s15 = sadd.s32 4294967295, %s1319_s14   ;;  %s1097_s16 = sadd.s32 4294967294, %s1319_s14   ;;  %s1319_s14 = sphi %s1350_s14, %s15_s14   ;;  %s1315_s13 = sphi %s1348_s13, %s1710_s13   ;;  %s1311_s12 = sphi %s1346_s12, %s1709_s12   ;;  %s1307_s11 = sphi %s1344_s11, %s1708_s11   ;;  %s1303_s10 = sphi %s1342_s10, %s1707_s10   ;;  %s1299_s9 = sphi %s1340_s9, %s1706_s9  }
   0x5   : > { %s27_s17 = sadd.s32 1, %s1315_s13  ;;  %s85_s18 = sadd.s32 1, %s1307_s11 }
   0x6   : > { %p29_p0 = scmp.ge.s32.totalorder %s27_s17, 2  ;;  %p95_p1 = scmp.ne.s32.totalorder %s1307_s11, %s1303_s10 }
   0x7   : > { %p96_p2 = scmp.eq.s32.totalorder %s1096_s15, 1  ;;  %p101_p3 = scmp.ne.s32.totalorder %s1303_s10, %s1299_s9 }
   0x8   : > { %s1712_s17 = smov (%p29_p0, %s27_s17), 0  ;;  %p102_p5 = scmp.eq.s32.totalorder %s1097_s16, 1 }
   0x9   : > { %p1380_p4 = por %p96_p2, %p95_p1  ;;  %s80_s20 = ssub.s32 %s1315_s13, %s1712_s17 }
   0xa   : > { %p1100_p6 = scmp.ge.s32.totalorder %s1319_s14, 1  ;;  %p83_p7 = scmp.eq.s32.totalorder %s80_s20, 0 }
   0xb   : > { %p1387_p8 = por %p102_p5, %p101_p3  ;;  %p136_p9 = scmp.lt.s32.totalorder %s1319_s14, 3 }
   0xc   : > { %s1393_s22 = scalar_select %p83_p7, %s1307_s11, %s85_s18  }
   0xd   : > { %p137_p10 = pnand %p1100_p6, %p136_p9 }
   0xe   : > { %p163_p11 = scmp.lt.s32.totalorder (!%p137_p10), %s1311_s12, 1  ;;  %s1322_s5 = smov (!%p137_p10), [#allocation2]  }
   0xf   : > { %140 = sbr.rel (%p137_p10) target bundleno = 364 (0x16c), region = 28  ;;  %s1247_s6 = sshll.u32 (!%p137_p10), %s1322_s5, 4  ;;  %s1248_s6 = int_to_ptr.vmem [resolvable:$false] %s1247_s6 }
  0x10   : > { %s1249_s7 = scalar_lea.vmem (!%p137_p10), %s1248_s6, 32768 }
  0x14   : > { %v1321_v0 = vmov 0   ;;  %s164_s23 = scalar_select %p163_p11, %s1311_s12, 1  ;;  %v1227_v5 = vld [vmem:[%s1701_s0] sm:$0xff]   ;;  %vm310_vm0 = vcmask 130048   ;;  %v1228_v6 = vld [vmem:[%s1701_s0 + $0x8] sm:$0xff]   ;;  %v1229_v7 = vld [vmem:[%s1701_s0 + $0x10] sm:$0xff]  }
  0x15   : > { %391 = vmatprep.mubr.bf16.mxu0 %v1321_v0  ;;  %584 = vmatprep.mubr.bf16.mxu1 %v1321_v0  ;;  %v1230_v8 = vld [vmem:[%s1701_s0 + $0x18] sm:$0xff]   ;;  %v1231_v9 = vld [vmem:[%s1701_s0 + $0x20] sm:$0xff]   ;;  %v1232_v10 = vld [vmem:[%s1701_s0 + $0x28] sm:$0xff]  }
  0x16   : > { %s1161_s24 = sshll.u32 %s164_s23, 5  ;;  %v1233_v11 = vld [vmem:[%s1701_s0 + $0x30] sm:$0xff]   ;;  %v1234_v12 = vld [vmem:[%s1701_s0 + $0x38] sm:$0xff]   ;;  %v1235_v13 = vld [vmem:[%s1701_s0 + $0x40] sm:$0xff]  }
  0x17   : > { %s170_s27 = scalar_lea.vmem %s1702_s1, %s1161_s24  ;;  %v1236_v14 = vld [vmem:[%s1701_s0 + $0x48] sm:$0xff]   ;;  %v1237_v15 = vld [vmem:[%s1701_s0 + $0x50] sm:$0xff]   ;;  %v1238_v16 = vld [vmem:[%s1701_s0 + $0x58] sm:$0xff]   ;;  %s159_s24 = sand.u32 1, %s1303_s10  }
  0x18   : > { %v1221_v1 = vld [vmem:[%s170_s27 + $0x4] ss:$16 sps:$4 sm:$0xff]   ;;  %v1223_v2 = vld [vmem:[%s170_s27 + $0xc] ss:$16 sps:$4 sm:$0xff]   ;;  %v1225_v3 = vld [vmem:[%s170_s27] ss:$16 sps:$4 sm:$0xff]  }
  0x19   : > { %373 = vmatprep.subr.bf16.mxu0 %v1221_v1  ;;  %v1226_v4 = vld [vmem:[%s170_s27 + $0x8] ss:$16 sps:$4 sm:$0xff]   ;;  %566 = vmatprep.subr.bf16.mxu1 %v1223_v2  ;;  %v1239_v17 = vld [vmem:[%s1701_s0 + $0x60] sm:$0xff]   ;;  %v1241_v19 = vld [vmem:[%s1701_s0 + $0x70] sm:$0xff]   ;;  %s1101_s25 = sshll.u32 %s159_s24, 10  ;;  %s1162_s27 = sshll.u32 %s1311_s12, 14 }
  0x1a   : > { %374 = vmatpush1.bf16.msra.mxu0 %v1225_v3  ;;  %567 = vmatpush1.bf16.msra.mxu1 %v1226_v4  ;;  %v1240_v18 = vld [vmem:[%s1701_s0 + $0x68] sm:$0xff]   ;;  %v1242_v20 = vld [vmem:[%s1701_s0 + $0x78] sm:$0xff]   ;;  %s1515_s26 = scalar_lea.vmem [#allocation2], %s1101_s25  ;;  %s1646_s3 = scalar_lea.hbm %s1703_s2, %s1162_s27 }
  0x1b   : > { %s1017_s28 = sshll.u32 %s1515_s26, 4  ;;  %s1656_s12 = scalar_lea.sflag [#allocation3], %s159_s24  ;;  %s1648_s28 = int_to_ptr.vmem [resolvable:$true] %s1017_s28 }
  0x1c   : > { %s1243_s4 = scalar_lea.vmem %s1648_s28, 16384  ;;  %p1250_p1 = scmp.lt.s32.totalorder %s1648_s28, %s1248_s6 }
  0x1d   : > { %1124 = vmatmul.mubr.msk.bf16.vlgmr.msra.gmra.mxu0 %vm310_vm0, %v1227_v5  ;;  %1140 = vmatmul.mubr.msk.bf16.vlgmr.msra.gmra.mxu1 %vm310_vm0, %v1227_v5  ;;  %p1244_p12 = scmp.ne.s32.totalorder %s1648_s28, %s1243_s4  ;;  %p1251_p2 = scmp.lt.s32.totalorder %s1249_s7, %s1243_s4 }
  0x1e   : > { %401 = vmatprep.mubr.bf16.mxu0 %v1321_v0  ;;  %594 = vmatprep.mubr.bf16.mxu1 %v1321_v0 }
  0x1f   : > { %p1245_p13 = pnand %p1244_p12, %p1380_p4  ;;  %p1252_p3 = por %p1251_p2, %p1250_p1 }
  0x21   : > { %p1246_p0 = pneg %p1245_p13 }
  0x23   : > { %p1253_p5 = pnand %p1252_p3, %p1246_p0 }
  0x25   : > { %1125 = vmatmul.mubr.msk.bf16.gmra.mxu0 %vm310_vm0, %v1228_v6  ;;  %1141 = vmatmul.mubr.msk.bf16.gmra.mxu1 %vm310_vm0, %v1228_v6 }
  0x26   : > { %411 = vmatprep.mubr.bf16.mxu0 %v1321_v0  ;;  %604 = vmatprep.mubr.bf16.mxu1 %v1321_v0 }
  0x2d   : > { %1126 = vmatmul.mubr.msk.bf16.gmra.mxu0 %vm310_vm0, %v1229_v7  ;;  %1142 = vmatmul.mubr.msk.bf16.gmra.mxu1 %vm310_vm0, %v1229_v7 }
  0x2e   : > { %421 = vmatprep.mubr.bf16.mxu0 %v1321_v0  ;;  %614 = vmatprep.mubr.bf16.mxu1 %v1321_v0 }
  0x35   : > { %1127 = vmatmul.mubr.msk.bf16.gmra.mxu0 %vm310_vm0, %v1230_v8  ;;  %1143 = vmatmul.mubr.msk.bf16.gmra.mxu1 %vm310_vm0, %v1230_v8 }
  0x36   : > { %431 = vmatprep.mubr.bf16.mxu0 %v1321_v0  ;;  %624 = vmatprep.mubr.bf16.mxu1 %v1321_v0 }
  0x3d   : > { %1128 = vmatmul.mubr.msk.bf16.gmra.mxu0 %vm310_vm0, %v1231_v9  ;;  %1144 = vmatmul.mubr.msk.bf16.gmra.mxu1 %vm310_vm0, %v1231_v9 }
  0x3e   : > { %441 = vmatprep.mubr.bf16.mxu0 %v1321_v0  ;;  %634 = vmatprep.mubr.bf16.mxu1 %v1321_v0 }
  0x45   : > { %1129 = vmatmul.mubr.msk.bf16.gmra.mxu0 %vm310_vm0, %v1232_v10  ;;  %1145 = vmatmul.mubr.msk.bf16.gmra.mxu1 %vm310_vm0, %v1232_v10 }
  0x46   : > { %451 = vmatprep.mubr.bf16.mxu0 %v1321_v0  ;;  %644 = vmatprep.mubr.bf16.mxu1 %v1321_v0 }
  0x4d   : > { %1130 = vmatmul.mubr.msk.bf16.gmra.mxu0 %vm310_vm0, %v1233_v11  ;;  %1146 = vmatmul.mubr.msk.bf16.gmra.mxu1 %vm310_vm0, %v1233_v11 }
  0x4e   : > { %461 = vmatprep.mubr.bf16.mxu0 %v1321_v0  ;;  %654 = vmatprep.mubr.bf16.mxu1 %v1321_v0 }
  0x55   : > { %1131 = vmatmul.mubr.msk.bf16.gmra.mxu0 %vm310_vm0, %v1234_v12  ;;  %1147 = vmatmul.mubr.msk.bf16.gmra.mxu1 %vm310_vm0, %v1234_v12 }
  0x56   : > { %471 = vmatprep.mubr.bf16.mxu0 %v1321_v0  ;;  %664 = vmatprep.mubr.bf16.mxu1 %v1321_v0 }
  0x5d   : > { %1132 = vmatmul.mubr.msk.bf16.gmra.mxu0 %vm310_vm0, %v1235_v13  ;;  %1148 = vmatmul.mubr.msk.bf16.gmra.mxu1 %vm310_vm0, %v1235_v13 }
  0x5e   : > { %481 = vmatprep.mubr.bf16.mxu0 %v1321_v0  ;;  %674 = vmatprep.mubr.bf16.mxu1 %v1321_v0 }
  0x65   : > { %1133 = vmatmul.mubr.msk.bf16.gmra.mxu0 %vm310_vm0, %v1236_v14  ;;  %1149 = vmatmul.mubr.msk.bf16.gmra.mxu1 %vm310_vm0, %v1236_v14 }
  0x66   : > { %491 = vmatprep.mubr.bf16.mxu0 %v1321_v0  ;;  %684 = vmatprep.mubr.bf16.mxu1 %v1321_v0 }
  0x6d   : > { %1134 = vmatmul.mubr.msk.bf16.gmra.mxu0 %vm310_vm0, %v1237_v15  ;;  %1150 = vmatmul.mubr.msk.bf16.gmra.mxu1 %vm310_vm0, %v1237_v15 }
  0x6e   : > { %501 = vmatprep.mubr.bf16.mxu0 %v1321_v0  ;;  %694 = vmatprep.mubr.bf16.mxu1 %v1321_v0 }
  0x75   : > { %1135 = vmatmul.mubr.msk.bf16.gmra.mxu0 %vm310_vm0, %v1238_v16  ;;  %1151 = vmatmul.mubr.msk.bf16.gmra.mxu1 %vm310_vm0, %v1238_v16 }
  0x76   : > { %511 = vmatprep.mubr.bf16.mxu0 %v1321_v0  ;;  %704 = vmatprep.mubr.bf16.mxu1 %v1321_v0 }
  0x7d   : > { %1136 = vmatmul.mubr.msk.bf16.gmra.mxu0 %vm310_vm0, %v1239_v17  ;;  %1152 = vmatmul.mubr.msk.bf16.gmra.mxu1 %vm310_vm0, %v1239_v17 }
  0x7e   : > { %521 = vmatprep.mubr.bf16.mxu0 %v1321_v0  ;;  %714 = vmatprep.mubr.bf16.mxu1 %v1321_v0 }
  0x85   : > { %1137 = vmatmul.mubr.msk.bf16.gmra.mxu0 %vm310_vm0, %v1240_v18  ;;  %1153 = vmatmul.mubr.msk.bf16.gmra.mxu1 %vm310_vm0, %v1240_v18 }
  0x86   : > { %531 = vmatprep.mubr.bf16.mxu0 %v1321_v0  ;;  %724 = vmatprep.mubr.bf16.mxu1 %v1321_v0 }
  0x8d   : > { %1138 = vmatmul.mubr.msk.bf16.gmra.mxu0 %vm310_vm0, %v1241_v19  ;;  %1154 = vmatmul.mubr.msk.bf16.gmra.mxu1 %vm310_vm0, %v1241_v19 }
  0x8e   : > { %541 = vmatprep.mubr.bf16.mxu0 %v1321_v0  ;;  %734 = vmatprep.mubr.bf16.mxu1 %v1321_v0 }
  0x95   : > { %1139 = vmatmul.mubr.msk.bf16.gmra.mxu0 %vm310_vm0, %v1242_v20  ;;  %1155 = vmatmul.mubr.msk.bf16.gmra.mxu1 %vm310_vm0, %v1242_v20 }
  0xdd   : > { %v393_v21 = vpop.f32.mrf.mxu0  ;;  %v586_v22 = vpop.f32.mrf.mxu1 }
  0xde   : > { %v745_v23 = vmax.f32 %v393_v21, 0.0  ;;  %v747_v24 = vmax.f32 %v586_v22, 0.0 }
  0xdf   : > { %v395_v25 = vpop.f32.mrf.mxu0  ;;  %v588_v26 = vpop.f32.mrf.mxu1 }
  0xe0   : > { %873 = vst [vmem:[%s1515_s26] sm:$0xff] %v745_v23  ;;  %875 = vst [vmem:[%s1515_s26 + $0x10] sm:$0xff] %v747_v24  ;;  %v746_v27 = vmax.f32 %v395_v25, 0.0  ;;  %v748_v28 = vmax.f32 %v588_v26, 0.0 }
  0xe1   : > { %v397_v29 = vpop.f32.mrf.mxu0  ;;  %v590_v30 = vpop.f32.mrf.mxu1 }
  0xe2   : > { %874 = vst [vmem:[%s1515_s26 + $0x8] sm:$0xff] %v746_v27  ;;  %876 = vst [vmem:[%s1515_s26 + $0x18] sm:$0xff] %v748_v28  ;;  %v749_v31 = vmax.f32 %v397_v29, 0.0  ;;  %v751_v32 = vmax.f32 %v590_v30, 0.0 }
  0xe3   : > { %v399_v33 = vpop.f32.mrf.mxu0  ;;  %v592_v34 = vpop.f32.mrf.mxu1 }
  0xe4   : > { %877 = vst [vmem:[%s1515_s26 + $0x20] sm:$0xff] %v749_v31  ;;  %879 = vst [vmem:[%s1515_s26 + $0x30] sm:$0xff] %v751_v32  ;;  %v750_v35 = vmax.f32 %v399_v33, 0.0  ;;  %v752_v36 = vmax.f32 %v592_v34, 0.0 }
  0xe5   : > { %v403_v37 = vpop.f32.mrf.mxu0  ;;  %v596_v38 = vpop.f32.mrf.mxu1 }
  0xe6   : > { %878 = vst [vmem:[%s1515_s26 + $0x28] sm:$0xff] %v750_v35  ;;  %880 = vst [vmem:[%s1515_s26 + $0x38] sm:$0xff] %v752_v36  ;;  %v753_v39 = vmax.f32 %v403_v37, 0.0  ;;  %v755_v40 = vmax.f32 %v596_v38, 0.0 }
  0xe7   : > { %v405_v41 = vpop.f32.mrf.mxu0  ;;  %v598_v42 = vpop.f32.mrf.mxu1 }
  0xe8   : > { %881 = vst [vmem:[%s1515_s26 + $0x40] sm:$0xff] %v753_v39  ;;  %883 = vst [vmem:[%s1515_s26 + $0x50] sm:$0xff] %v755_v40  ;;  %v754_v43 = vmax.f32 %v405_v41, 0.0  ;;  %v756_v44 = vmax.f32 %v598_v42, 0.0 }
  0xe9   : > { %v407_v45 = vpop.f32.mrf.mxu0  ;;  %v600_v46 = vpop.f32.mrf.mxu1 }
  0xea   : > { %882 = vst [vmem:[%s1515_s26 + $0x48] sm:$0xff] %v754_v43  ;;  %884 = vst [vmem:[%s1515_s26 + $0x58] sm:$0xff] %v756_v44  ;;  %v757_v47 = vmax.f32 %v407_v45, 0.0  ;;  %v759_v48 = vmax.f32 %v600_v46, 0.0 }
  0xeb   : > { %v409_v49 = vpop.f32.mrf.mxu0  ;;  %v602_v50 = vpop.f32.mrf.mxu1 }
  0xec   : > { %885 = vst [vmem:[%s1515_s26 + $0x60] sm:$0xff] %v757_v47  ;;  %887 = vst [vmem:[%s1515_s26 + $0x70] sm:$0xff] %v759_v48  ;;  %v758_v51 = vmax.f32 %v409_v49, 0.0  ;;  %v760_v52 = vmax.f32 %v602_v50, 0.0 }
  0xed   : > { %v413_v53 = vpop.f32.mrf.mxu0  ;;  %v606_v54 = vpop.f32.mrf.mxu1 }
  0xee   : > { %886 = vst [vmem:[%s1515_s26 + $0x68] sm:$0xff] %v758_v51  ;;  %888 = vst [vmem:[%s1515_s26 + $0x78] sm:$0xff] %v760_v52  ;;  %v761_v55 = vmax.f32 %v413_v53, 0.0  ;;  %v763_v56 = vmax.f32 %v606_v54, 0.0 }
  0xef   : > { %v415_v57 = vpop.f32.mrf.mxu0  ;;  %v608_v58 = vpop.f32.mrf.mxu1 }
  0xf0   : > { %889 = vst [vmem:[%s1515_s26 + $0x80] sm:$0xff] %v761_v55  ;;  %891 = vst [vmem:[%s1515_s26 + $0x90] sm:$0xff] %v763_v56  ;;  %v762_v59 = vmax.f32 %v415_v57, 0.0  ;;  %v764_v60 = vmax.f32 %v608_v58, 0.0 }
  0xf1   : > { %v417_v61 = vpop.f32.mrf.mxu0  ;;  %v610_v62 = vpop.f32.mrf.mxu1 }
  0xf2   : > { %890 = vst [vmem:[%s1515_s26 + $0x88] sm:$0xff] %v762_v59  ;;  %892 = vst [vmem:[%s1515_s26 + $0x98] sm:$0xff] %v764_v60  ;;  %v765_v63 = vmax.f32 %v417_v61, 0.0  ;;  %v767_v0 = vmax.f32 %v610_v62, 0.0 }
  0xf3   : > { %v419_v1 = vpop.f32.mrf.mxu0  ;;  %v612_v2 = vpop.f32.mrf.mxu1 }
  0xf4   : > { %893 = vst [vmem:[%s1515_s26 + $0xa0] sm:$0xff] %v765_v63  ;;  %895 = vst [vmem:[%s1515_s26 + $0xb0] sm:$0xff] %v767_v0  ;;  %v766_v3 = vmax.f32 %v419_v1, 0.0  ;;  %v768_v4 = vmax.f32 %v612_v2, 0.0 }
  0xf5   : > { %v423_v5 = vpop.f32.mrf.mxu0  ;;  %v616_v6 = vpop.f32.mrf.mxu1 }
  0xf6   : > { %894 = vst [vmem:[%s1515_s26 + $0xa8] sm:$0xff] %v766_v3  ;;  %896 = vst [vmem:[%s1515_s26 + $0xb8] sm:$0xff] %v768_v4  ;;  %v769_v7 = vmax.f32 %v423_v5, 0.0  ;;  %v771_v8 = vmax.f32 %v616_v6, 0.0 }
  0xf7   : > { %v425_v9 = vpop.f32.mrf.mxu0  ;;  %v618_v10 = vpop.f32.mrf.mxu1 }
  0xf8   : > { %897 = vst [vmem:[%s1515_s26 + $0xc0] sm:$0xff] %v769_v7  ;;  %899 = vst [vmem:[%s1515_s26 + $0xd0] sm:$0xff] %v771_v8  ;;  %v770_v11 = vmax.f32 %v425_v9, 0.0  ;;  %v772_v12 = vmax.f32 %v618_v10, 0.0 }
  0xf9   : > { %v427_v13 = vpop.f32.mrf.mxu0  ;;  %v620_v14 = vpop.f32.mrf.mxu1 }
  0xfa   : > { %898 = vst [vmem:[%s1515_s26 + $0xc8] sm:$0xff] %v770_v11  ;;  %900 = vst [vmem:[%s1515_s26 + $0xd8] sm:$0xff] %v772_v12  ;;  %v773_v15 = vmax.f32 %v427_v13, 0.0  ;;  %v775_v16 = vmax.f32 %v620_v14, 0.0 }
  0xfb   : > { %v429_v17 = vpop.f32.mrf.mxu0  ;;  %v622_v18 = vpop.f32.mrf.mxu1 }
  0xfc   : > { %901 = vst [vmem:[%s1515_s26 + $0xe0] sm:$0xff] %v773_v15  ;;  %903 = vst [vmem:[%s1515_s26 + $0xf0] sm:$0xff] %v775_v16  ;;  %v774_v19 = vmax.f32 %v429_v17, 0.0  ;;  %v776_v20 = vmax.f32 %v622_v18, 0.0 }
  0xfd   : > { %v433_v21 = vpop.f32.mrf.mxu0  ;;  %v626_v22 = vpop.f32.mrf.mxu1 }
  0xfe   : > { %902 = vst [vmem:[%s1515_s26 + $0xe8] sm:$0xff] %v774_v19  ;;  %904 = vst [vmem:[%s1515_s26 + $0xf8] sm:$0xff] %v776_v20  ;;  %v777_v23 = vmax.f32 %v433_v21, 0.0  ;;  %v779_v24 = vmax.f32 %v626_v22, 0.0 }
  0xff   : > { %v435_v25 = vpop.f32.mrf.mxu0  ;;  %v628_v26 = vpop.f32.mrf.mxu1 }
 0x100   : > { %905 = vst [vmem:[%s1515_s26 + $0x100] sm:$0xff] %v777_v23  ;;  %907 = vst [vmem:[%s1515_s26 + $0x110] sm:$0xff] %v779_v24  ;;  %v778_v27 = vmax.f32 %v435_v25, 0.0  ;;  %v780_v28 = vmax.f32 %v628_v26, 0.0 }
 0x101   : > { %v437_v29 = vpop.f32.mrf.mxu0  ;;  %v630_v30 = vpop.f32.mrf.mxu1 }
 0x102   : > { %906 = vst [vmem:[%s1515_s26 + $0x108] sm:$0xff] %v778_v27  ;;  %908 = vst [vmem:[%s1515_s26 + $0x118] sm:$0xff] %v780_v28  ;;  %v781_v31 = vmax.f32 %v437_v29, 0.0  ;;  %v783_v32 = vmax.f32 %v630_v30, 0.0 }
 0x103   : > { %v439_v33 = vpop.f32.mrf.mxu0  ;;  %v632_v34 = vpop.f32.mrf.mxu1 }
 0x104   : > { %909 = vst [vmem:[%s1515_s26 + $0x120] sm:$0xff] %v781_v31  ;;  %911 = vst [vmem:[%s1515_s26 + $0x130] sm:$0xff] %v783_v32  ;;  %v782_v35 = vmax.f32 %v439_v33, 0.0  ;;  %v784_v36 = vmax.f32 %v632_v34, 0.0 }
 0x105   : > { %v443_v37 = vpop.f32.mrf.mxu0  ;;  %v636_v38 = vpop.f32.mrf.mxu1 }
 0x106   : > { %910 = vst [vmem:[%s1515_s26 + $0x128] sm:$0xff] %v782_v35  ;;  %912 = vst [vmem:[%s1515_s26 + $0x138] sm:$0xff] %v784_v36  ;;  %v785_v39 = vmax.f32 %v443_v37, 0.0  ;;  %v787_v40 = vmax.f32 %v636_v38, 0.0 }
 0x107   : > { %v445_v41 = vpop.f32.mrf.mxu0  ;;  %v638_v42 = vpop.f32.mrf.mxu1 }
 0x108   : > { %913 = vst [vmem:[%s1515_s26 + $0x140] sm:$0xff] %v785_v39  ;;  %915 = vst [vmem:[%s1515_s26 + $0x150] sm:$0xff] %v787_v40  ;;  %v786_v43 = vmax.f32 %v445_v41, 0.0  ;;  %v788_v44 = vmax.f32 %v638_v42, 0.0 }
 0x109   : > { %v447_v45 = vpop.f32.mrf.mxu0  ;;  %v640_v46 = vpop.f32.mrf.mxu1 }
 0x10a   : > { %914 = vst [vmem:[%s1515_s26 + $0x148] sm:$0xff] %v786_v43  ;;  %916 = vst [vmem:[%s1515_s26 + $0x158] sm:$0xff] %v788_v44  ;;  %v789_v47 = vmax.f32 %v447_v45, 0.0  ;;  %v791_v48 = vmax.f32 %v640_v46, 0.0 }
 0x10b   : > { %v449_v49 = vpop.f32.mrf.mxu0  ;;  %v642_v50 = vpop.f32.mrf.mxu1 }
 0x10c   : > { %917 = vst [vmem:[%s1515_s26 + $0x160] sm:$0xff] %v789_v47  ;;  %919 = vst [vmem:[%s1515_s26 + $0x170] sm:$0xff] %v791_v48  ;;  %v790_v51 = vmax.f32 %v449_v49, 0.0  ;;  %v792_v52 = vmax.f32 %v642_v50, 0.0 }
 0x10d   : > { %v453_v53 = vpop.f32.mrf.mxu0  ;;  %v646_v54 = vpop.f32.mrf.mxu1 }
 0x10e   : > { %918 = vst [vmem:[%s1515_s26 + $0x168] sm:$0xff] %v790_v51  ;;  %920 = vst [vmem:[%s1515_s26 + $0x178] sm:$0xff] %v792_v52  ;;  %v793_v55 = vmax.f32 %v453_v53, 0.0  ;;  %v795_v56 = vmax.f32 %v646_v54, 0.0 }
 0x10f   : > { %v455_v57 = vpop.f32.mrf.mxu0  ;;  %v648_v58 = vpop.f32.mrf.mxu1 }
 0x110   : > { %921 = vst [vmem:[%s1515_s26 + $0x180] sm:$0xff] %v793_v55  ;;  %923 = vst [vmem:[%s1515_s26 + $0x190] sm:$0xff] %v795_v56  ;;  %v794_v59 = vmax.f32 %v455_v57, 0.0  ;;  %v796_v60 = vmax.f32 %v648_v58, 0.0 }
 0x111   : > { %v457_v61 = vpop.f32.mrf.mxu0  ;;  %v650_v62 = vpop.f32.mrf.mxu1 }
 0x112   : > { %922 = vst [vmem:[%s1515_s26 + $0x188] sm:$0xff] %v794_v59  ;;  %924 = vst [vmem:[%s1515_s26 + $0x198] sm:$0xff] %v796_v60  ;;  %v797_v63 = vmax.f32 %v457_v61, 0.0  ;;  %v799_v0 = vmax.f32 %v650_v62, 0.0 }
 0x113   : > { %v459_v1 = vpop.f32.mrf.mxu0  ;;  %v652_v2 = vpop.f32.mrf.mxu1 }
 0x114   : > { %925 = vst [vmem:[%s1515_s26 + $0x1a0] sm:$0xff] %v797_v63  ;;  %927 = vst [vmem:[%s1515_s26 + $0x1b0] sm:$0xff] %v799_v0  ;;  %v798_v3 = vmax.f32 %v459_v1, 0.0  ;;  %v800_v4 = vmax.f32 %v652_v2, 0.0 }
 0x115   : > { %v463_v5 = vpop.f32.mrf.mxu0  ;;  %v656_v6 = vpop.f32.mrf.mxu1 }
 0x116   : > { %926 = vst [vmem:[%s1515_s26 + $0x1a8] sm:$0xff] %v798_v3  ;;  %928 = vst [vmem:[%s1515_s26 + $0x1b8] sm:$0xff] %v800_v4  ;;  %v801_v7 = vmax.f32 %v463_v5, 0.0  ;;  %v803_v8 = vmax.f32 %v656_v6, 0.0 }
 0x117   : > { %v465_v9 = vpop.f32.mrf.mxu0  ;;  %v658_v10 = vpop.f32.mrf.mxu1 }
 0x118   : > { %929 = vst [vmem:[%s1515_s26 + $0x1c0] sm:$0xff] %v801_v7  ;;  %931 = vst [vmem:[%s1515_s26 + $0x1d0] sm:$0xff] %v803_v8  ;;  %v802_v11 = vmax.f32 %v465_v9, 0.0  ;;  %v804_v12 = vmax.f32 %v658_v10, 0.0 }
 0x119   : > { %v467_v13 = vpop.f32.mrf.mxu0  ;;  %v660_v14 = vpop.f32.mrf.mxu1 }
 0x11a   : > { %930 = vst [vmem:[%s1515_s26 + $0x1c8] sm:$0xff] %v802_v11  ;;  %932 = vst [vmem:[%s1515_s26 + $0x1d8] sm:$0xff] %v804_v12  ;;  %v805_v15 = vmax.f32 %v467_v13, 0.0  ;;  %v807_v16 = vmax.f32 %v660_v14, 0.0 }
 0x11b   : > { %v469_v17 = vpop.f32.mrf.mxu0  ;;  %v662_v18 = vpop.f32.mrf.mxu1 }
 0x11c   : > { %933 = vst [vmem:[%s1515_s26 + $0x1e0] sm:$0xff] %v805_v15  ;;  %935 = vst [vmem:[%s1515_s26 + $0x1f0] sm:$0xff] %v807_v16  ;;  %v806_v19 = vmax.f32 %v469_v17, 0.0  ;;  %v808_v20 = vmax.f32 %v662_v18, 0.0 }
 0x11d   : > { %v473_v21 = vpop.f32.mrf.mxu0  ;;  %v666_v22 = vpop.f32.mrf.mxu1 }
 0x11e   : > { %934 = vst [vmem:[%s1515_s26 + $0x1e8] sm:$0xff] %v806_v19  ;;  %936 = vst [vmem:[%s1515_s26 + $0x1f8] sm:$0xff] %v808_v20  ;;  %v809_v23 = vmax.f32 %v473_v21, 0.0  ;;  %v811_v24 = vmax.f32 %v666_v22, 0.0 }
 0x11f   : > { %v475_v25 = vpop.f32.mrf.mxu0  ;;  %v668_v26 = vpop.f32.mrf.mxu1 }
 0x120   : > { %937 = vst [vmem:[%s1515_s26 + $0x200] sm:$0xff] %v809_v23  ;;  %939 = vst [vmem:[%s1515_s26 + $0x210] sm:$0xff] %v811_v24  ;;  %v810_v27 = vmax.f32 %v475_v25, 0.0  ;;  %v812_v28 = vmax.f32 %v668_v26, 0.0 }
 0x121   : > { %v477_v29 = vpop.f32.mrf.mxu0  ;;  %v670_v30 = vpop.f32.mrf.mxu1 }
 0x122   : > { %938 = vst [vmem:[%s1515_s26 + $0x208] sm:$0xff] %v810_v27  ;;  %940 = vst [vmem:[%s1515_s26 + $0x218] sm:$0xff] %v812_v28  ;;  %v813_v31 = vmax.f32 %v477_v29, 0.0  ;;  %v815_v32 = vmax.f32 %v670_v30, 0.0 }
 0x123   : > { %v479_v33 = vpop.f32.mrf.mxu0  ;;  %v672_v34 = vpop.f32.mrf.mxu1 }
 0x124   : > { %941 = vst [vmem:[%s1515_s26 + $0x220] sm:$0xff] %v813_v31  ;;  %943 = vst [vmem:[%s1515_s26 + $0x230] sm:$0xff] %v815_v32  ;;  %v814_v35 = vmax.f32 %v479_v33, 0.0  ;;  %v816_v36 = vmax.f32 %v672_v34, 0.0 }
 0x125   : > { %v483_v37 = vpop.f32.mrf.mxu0  ;;  %v676_v38 = vpop.f32.mrf.mxu1 }
 0x126   : > { %942 = vst [vmem:[%s1515_s26 + $0x228] sm:$0xff] %v814_v35  ;;  %944 = vst [vmem:[%s1515_s26 + $0x238] sm:$0xff] %v816_v36  ;;  %v817_v39 = vmax.f32 %v483_v37, 0.0  ;;  %v819_v40 = vmax.f32 %v676_v38, 0.0 }
 0x127   : > { %v485_v41 = vpop.f32.mrf.mxu0  ;;  %v678_v42 = vpop.f32.mrf.mxu1 }
 0x128   : > { %945 = vst [vmem:[%s1515_s26 + $0x240] sm:$0xff] %v817_v39  ;;  %947 = vst [vmem:[%s1515_s26 + $0x250] sm:$0xff] %v819_v40  ;;  %v818_v43 = vmax.f32 %v485_v41, 0.0  ;;  %v820_v44 = vmax.f32 %v678_v42, 0.0 }
 0x129   : > { %v487_v45 = vpop.f32.mrf.mxu0  ;;  %v680_v46 = vpop.f32.mrf.mxu1 }
 0x12a   : > { %946 = vst [vmem:[%s1515_s26 + $0x248] sm:$0xff] %v818_v43  ;;  %948 = vst [vmem:[%s1515_s26 + $0x258] sm:$0xff] %v820_v44  ;;  %v821_v47 = vmax.f32 %v487_v45, 0.0  ;;  %v823_v48 = vmax.f32 %v680_v46, 0.0 }
 0x12b   : > { %v489_v49 = vpop.f32.mrf.mxu0  ;;  %v682_v50 = vpop.f32.mrf.mxu1 }
 0x12c   : > { %949 = vst [vmem:[%s1515_s26 + $0x260] sm:$0xff] %v821_v47  ;;  %951 = vst [vmem:[%s1515_s26 + $0x270] sm:$0xff] %v823_v48  ;;  %v822_v51 = vmax.f32 %v489_v49, 0.0  ;;  %v824_v52 = vmax.f32 %v682_v50, 0.0 }
 0x12d   : > { %v493_v53 = vpop.f32.mrf.mxu0  ;;  %v686_v54 = vpop.f32.mrf.mxu1 }
 0x12e   : > { %950 = vst [vmem:[%s1515_s26 + $0x268] sm:$0xff] %v822_v51  ;;  %952 = vst [vmem:[%s1515_s26 + $0x278] sm:$0xff] %v824_v52  ;;  %v825_v55 = vmax.f32 %v493_v53, 0.0  ;;  %v827_v56 = vmax.f32 %v686_v54, 0.0 }
 0x12f   : > { %v495_v57 = vpop.f32.mrf.mxu0  ;;  %v688_v58 = vpop.f32.mrf.mxu1 }
 0x130   : > { %953 = vst [vmem:[%s1515_s26 + $0x280] sm:$0xff] %v825_v55  ;;  %955 = vst [vmem:[%s1515_s26 + $0x290] sm:$0xff] %v827_v56  ;;  %v826_v59 = vmax.f32 %v495_v57, 0.0  ;;  %v828_v60 = vmax.f32 %v688_v58, 0.0 }
 0x131   : > { %v497_v61 = vpop.f32.mrf.mxu0  ;;  %v690_v62 = vpop.f32.mrf.mxu1 }
 0x132   : > { %954 = vst [vmem:[%s1515_s26 + $0x288] sm:$0xff] %v826_v59  ;;  %956 = vst [vmem:[%s1515_s26 + $0x298] sm:$0xff] %v828_v60  ;;  %v829_v63 = vmax.f32 %v497_v61, 0.0  ;;  %v831_v0 = vmax.f32 %v690_v62, 0.0 }
 0x133   : > { %v499_v1 = vpop.f32.mrf.mxu0  ;;  %v692_v2 = vpop.f32.mrf.mxu1 }
 0x134   : > { %957 = vst [vmem:[%s1515_s26 + $0x2a0] sm:$0xff] %v829_v63  ;;  %959 = vst [vmem:[%s1515_s26 + $0x2b0] sm:$0xff] %v831_v0  ;;  %v830_v3 = vmax.f32 %v499_v1, 0.0  ;;  %v832_v4 = vmax.f32 %v692_v2, 0.0 }
 0x135   : > { %v503_v5 = vpop.f32.mrf.mxu0  ;;  %v696_v6 = vpop.f32.mrf.mxu1 }
 0x136   : > { %958 = vst [vmem:[%s1515_s26 + $0x2a8] sm:$0xff] %v830_v3  ;;  %960 = vst [vmem:[%s1515_s26 + $0x2b8] sm:$0xff] %v832_v4  ;;  %v833_v7 = vmax.f32 %v503_v5, 0.0  ;;  %v835_v8 = vmax.f32 %v696_v6, 0.0 }
 0x137   : > { %v505_v9 = vpop.f32.mrf.mxu0  ;;  %v698_v10 = vpop.f32.mrf.mxu1 }
 0x138   : > { %961 = vst [vmem:[%s1515_s26 + $0x2c0] sm:$0xff] %v833_v7  ;;  %963 = vst [vmem:[%s1515_s26 + $0x2d0] sm:$0xff] %v835_v8  ;;  %v834_v11 = vmax.f32 %v505_v9, 0.0  ;;  %v836_v12 = vmax.f32 %v698_v10, 0.0 }
 0x139   : > { %v507_v13 = vpop.f32.mrf.mxu0  ;;  %v700_v14 = vpop.f32.mrf.mxu1 }
 0x13a   : > { %962 = vst [vmem:[%s1515_s26 + $0x2c8] sm:$0xff] %v834_v11  ;;  %964 = vst [vmem:[%s1515_s26 + $0x2d8] sm:$0xff] %v836_v12  ;;  %v837_v15 = vmax.f32 %v507_v13, 0.0  ;;  %v839_v16 = vmax.f32 %v700_v14, 0.0 }
 0x13b   : > { %v509_v17 = vpop.f32.mrf.mxu0  ;;  %v702_v18 = vpop.f32.mrf.mxu1 }
 0x13c   : > { %965 = vst [vmem:[%s1515_s26 + $0x2e0] sm:$0xff] %v837_v15  ;;  %967 = vst [vmem:[%s1515_s26 + $0x2f0] sm:$0xff] %v839_v16  ;;  %v838_v19 = vmax.f32 %v509_v17, 0.0  ;;  %v840_v20 = vmax.f32 %v702_v18, 0.0 }
 0x13d   : > { %v513_v21 = vpop.f32.mrf.mxu0  ;;  %v706_v22 = vpop.f32.mrf.mxu1 }
 0x13e   : > { %966 = vst [vmem:[%s1515_s26 + $0x2e8] sm:$0xff] %v838_v19  ;;  %968 = vst [vmem:[%s1515_s26 + $0x2f8] sm:$0xff] %v840_v20  ;;  %v841_v23 = vmax.f32 %v513_v21, 0.0  ;;  %v843_v24 = vmax.f32 %v706_v22, 0.0 }
 0x13f   : > { %v515_v25 = vpop.f32.mrf.mxu0  ;;  %v708_v26 = vpop.f32.mrf.mxu1 }
 0x140   : > { %969 = vst [vmem:[%s1515_s26 + $0x300] sm:$0xff] %v841_v23  ;;  %971 = vst [vmem:[%s1515_s26 + $0x310] sm:$0xff] %v843_v24  ;;  %v842_v27 = vmax.f32 %v515_v25, 0.0  ;;  %v844_v28 = vmax.f32 %v708_v26, 0.0 }
 0x141   : > { %v517_v29 = vpop.f32.mrf.mxu0  ;;  %v710_v30 = vpop.f32.mrf.mxu1 }
 0x142   : > { %970 = vst [vmem:[%s1515_s26 + $0x308] sm:$0xff] %v842_v27  ;;  %972 = vst [vmem:[%s1515_s26 + $0x318] sm:$0xff] %v844_v28  ;;  %v845_v31 = vmax.f32 %v517_v29, 0.0  ;;  %v847_v32 = vmax.f32 %v710_v30, 0.0 }
 0x143   : > { %v519_v33 = vpop.f32.mrf.mxu0  ;;  %v712_v34 = vpop.f32.mrf.mxu1 }
 0x144   : > { %973 = vst [vmem:[%s1515_s26 + $0x320] sm:$0xff] %v845_v31  ;;  %975 = vst [vmem:[%s1515_s26 + $0x330] sm:$0xff] %v847_v32  ;;  %v846_v35 = vmax.f32 %v519_v33, 0.0  ;;  %v848_v36 = vmax.f32 %v712_v34, 0.0 }
 0x145   : > { %v523_v37 = vpop.f32.mrf.mxu0  ;;  %v716_v38 = vpop.f32.mrf.mxu1 }
 0x146   : > { %974 = vst [vmem:[%s1515_s26 + $0x328] sm:$0xff] %v846_v35  ;;  %976 = vst [vmem:[%s1515_s26 + $0x338] sm:$0xff] %v848_v36  ;;  %v849_v39 = vmax.f32 %v523_v37, 0.0  ;;  %v851_v40 = vmax.f32 %v716_v38, 0.0 }
 0x147   : > { %v525_v41 = vpop.f32.mrf.mxu0  ;;  %v718_v42 = vpop.f32.mrf.mxu1 }
 0x148   : > { %977 = vst [vmem:[%s1515_s26 + $0x340] sm:$0xff] %v849_v39  ;;  %979 = vst [vmem:[%s1515_s26 + $0x350] sm:$0xff] %v851_v40  ;;  %v850_v43 = vmax.f32 %v525_v41, 0.0  ;;  %v852_v44 = vmax.f32 %v718_v42, 0.0 }
 0x149   : > { %v527_v45 = vpop.f32.mrf.mxu0  ;;  %v720_v46 = vpop.f32.mrf.mxu1 }
 0x14a   : > { %978 = vst [vmem:[%s1515_s26 + $0x348] sm:$0xff] %v850_v43  ;;  %980 = vst [vmem:[%s1515_s26 + $0x358] sm:$0xff] %v852_v44  ;;  %v853_v47 = vmax.f32 %v527_v45, 0.0  ;;  %v855_v48 = vmax.f32 %v720_v46, 0.0 }
 0x14b   : > { %v529_v49 = vpop.f32.mrf.mxu0  ;;  %v722_v50 = vpop.f32.mrf.mxu1 }
 0x14c   : > { %981 = vst [vmem:[%s1515_s26 + $0x360] sm:$0xff] %v853_v47  ;;  %983 = vst [vmem:[%s1515_s26 + $0x370] sm:$0xff] %v855_v48  ;;  %v854_v51 = vmax.f32 %v529_v49, 0.0  ;;  %v856_v52 = vmax.f32 %v722_v50, 0.0 }
 0x14d   : > { %v533_v53 = vpop.f32.mrf.mxu0  ;;  %v726_v54 = vpop.f32.mrf.mxu1 }
 0x14e   : > { %982 = vst [vmem:[%s1515_s26 + $0x368] sm:$0xff] %v854_v51  ;;  %984 = vst [vmem:[%s1515_s26 + $0x378] sm:$0xff] %v856_v52  ;;  %v857_v55 = vmax.f32 %v533_v53, 0.0  ;;  %v859_v56 = vmax.f32 %v726_v54, 0.0 }
 0x14f   : > { %v535_v57 = vpop.f32.mrf.mxu0  ;;  %v728_v58 = vpop.f32.mrf.mxu1 }
 0x150   : > { %985 = vst [vmem:[%s1515_s26 + $0x380] sm:$0xff] %v857_v55  ;;  %987 = vst [vmem:[%s1515_s26 + $0x390] sm:$0xff] %v859_v56  ;;  %v858_v59 = vmax.f32 %v535_v57, 0.0  ;;  %v860_v60 = vmax.f32 %v728_v58, 0.0 }
 0x151   : > { %v537_v61 = vpop.f32.mrf.mxu0  ;;  %v730_v62 = vpop.f32.mrf.mxu1 }
 0x152   : > { %986 = vst [vmem:[%s1515_s26 + $0x388] sm:$0xff] %v858_v59  ;;  %988 = vst [vmem:[%s1515_s26 + $0x398] sm:$0xff] %v860_v60  ;;  %v861_v63 = vmax.f32 %v537_v61, 0.0  ;;  %v863_v0 = vmax.f32 %v730_v62, 0.0 }
 0x153   : > { %v539_v1 = vpop.f32.mrf.mxu0  ;;  %v732_v2 = vpop.f32.mrf.mxu1 }
 0x154   : > { %989 = vst [vmem:[%s1515_s26 + $0x3a0] sm:$0xff] %v861_v63  ;;  %991 = vst [vmem:[%s1515_s26 + $0x3b0] sm:$0xff] %v863_v0  ;;  %v862_v3 = vmax.f32 %v539_v1, 0.0  ;;  %v864_v4 = vmax.f32 %v732_v2, 0.0 }
 0x155   : > { %v543_v5 = vpop.f32.mrf.mxu0  ;;  %v736_v6 = vpop.f32.mrf.mxu1 }
 0x156   : > { %990 = vst [vmem:[%s1515_s26 + $0x3a8] sm:$0xff] %v862_v3  ;;  %992 = vst [vmem:[%s1515_s26 + $0x3b8] sm:$0xff] %v864_v4  ;;  %v865_v7 = vmax.f32 %v543_v5, 0.0  ;;  %v867_v8 = vmax.f32 %v736_v6, 0.0 }
 0x157   : > { %v545_v9 = vpop.f32.mrf.mxu0  ;;  %v738_v10 = vpop.f32.mrf.mxu1 }
 0x158   : > { %993 = vst [vmem:[%s1515_s26 + $0x3c0] sm:$0xff] %v865_v7  ;;  %995 = vst [vmem:[%s1515_s26 + $0x3d0] sm:$0xff] %v867_v8  ;;  %v866_v11 = vmax.f32 %v545_v9, 0.0  ;;  %v868_v12 = vmax.f32 %v738_v10, 0.0 }
 0x159   : > { %v547_v13 = vpop.f32.mrf.mxu0  ;;  %v740_v14 = vpop.f32.mrf.mxu1 }
 0x15a   : > { %994 = vst [vmem:[%s1515_s26 + $0x3c8] sm:$0xff] %v866_v11  ;;  %996 = vst [vmem:[%s1515_s26 + $0x3d8] sm:$0xff] %v868_v12  ;;  %v869_v15 = vmax.f32 %v547_v13, 0.0  ;;  %v871_v16 = vmax.f32 %v740_v14, 0.0 }
 0x15b   : > { %v549_v17 = vpop.f32.mrf.mxu0  ;;  %v742_v18 = vpop.f32.mrf.mxu1 }
 0x15c   : > { %997 = vst [vmem:[%s1515_s26 + $0x3e0] sm:$0xff] %v869_v15  ;;  %999 = vst [vmem:[%s1515_s26 + $0x3f0] sm:$0xff] %v871_v16  ;;  %v870_v19 = vmax.f32 %v549_v17, 0.0  ;;  %v872_v20 = vmax.f32 %v742_v18, 0.0 }
 0x15e   : > { %998 = vst [vmem:[%s1515_s26 + $0x3e8] sm:$0xff] %v870_v19  ;;  %1000 = vst [vmem:[%s1515_s26 + $0x3f8] sm:$0xff] %v872_v20 }
 0x15f   : > { %1256 = shalt.err (!%p1253_p5)
}
 0x160   : > { %s1257_s8 = scalar_lea.hbm %s1646_s3, 16384  ;;  %s1261_s18 = scalar_lea.hbm %s1703_s2, 32768 }
 0x161   : > { %p1258_p6 = scmp.ne.s32.totalorder %s1646_s3, %s1257_s8  ;;  %p1262_p10 = scmp.lt.s32.totalorder %s1646_s3, %s1703_s2 }
 0x162   : > { %p1263_p11 = scmp.lt.s32.totalorder %s1261_s18, %s1257_s8 }
 0x163   : > { %p1259_p7 = pnand %p1258_p6, %p1380_p4 }
 0x164   : > { %p1264_p12 = por %p1263_p11, %p1262_p10 }
 0x165   : > { %p1260_p9 = pneg %p1259_p7 }
 0x167   : > { %p1265_p13 = pnand %p1264_p12, %p1260_p9 }
 0x169   : > { %1268 = shalt.err (!%p1265_p13)
}
 0x16a   : > { %s1323_s24 = smov 512   ;;  %s1324_s25 = smov 32  }
 0x16b   : > { %1163 = dma.vmem_to_hbm [thread:$0]  (%p1380_p4), %s1648_s28, 16384, %s1646_s3, %s1656_s12, %s1323_s24, %s1323_s24, %s1324_s25  }
 0x16c PF: > { %p1169_p0 = scmp.ge.s32.totalorder %s1319_s14, 2  ;;  %s1032_s26 = sand.u32 1, %s1299_s9  }
 0x16d   : > { %s1033_s27 = scalar_lea.sflag [#allocation3], %s1032_s26 }
 0x16e   : > { %p1166_p1 = pnand %p1169_p0, %p1387_p8 }
 0x170   : > { %p1167_p2 = pneg %p1166_p1 }
 0x172   : > { %1294 = dma.done.wait (%p1167_p2), %s1033_s27, 16384  }
 0x173   : > { %1296 = vsyncadd (%p1167_p2), %s1033_s27, 4294950912  ;;  %s15_s14 = sadd.s32 1, %s1319_s14   ;;  %s1706_s9 = smov %s1303_s10 }
 0x174   : > { %p12_p3 = scmp.ge.s32.totalorder %s15_s14, 4   ;;  %s1707_s10 = smov %s1307_s11 }
 0x175   : > { %s1708_s11 = smov %s1393_s22  ;;  %s1709_s12 = smov %s1315_s13 }
 0x176   : > { %s1710_s13 = smov %s1712_s17  ;;  %14 = sbr.rel (!%p12_p3) target bundleno = 4 (0x4), region = 63 }
 0x17b   :  { %1038 = vsyncpa [#allocation3], 1 }
 0x17c   :  { %1040 = vsyncpa [#allocation3 + $0x1], 1 }

</bundles_post_ra>
